<compile_context>
chip_gen: v7x
topology: tpu7x:2x2x1
jax: 0.10.0
libtpu: 0.0.40
codegen_flags: <defaults>
</compile_context>

<pallas_src>
import jax
import jax.numpy as jnp
from jax.experimental import pallas as pl
from jax.experimental.pallas import tpu as pltpu


def _round_up(x, m):
    return (x + m - 1) // m * m


def _vmem_budget_bytes():
    # Generation-aware scoped-VMEM budget: ~half of physical VMEM, capped at 64 MiB
    # (v5e/v6e: 128 MiB physical -> 64 MiB scoped; v7x: 64 MiB physical -> 32 MiB).
    try:
        cap = pltpu.get_tpu_info().vmem_capacity_bytes
    except Exception:
        cap = 64 * 1024 * 1024
    return min(cap // 2, 64 * 1024 * 1024)


def _pick_tile(dim_pad, cap):
    """dim_pad is a multiple of 128.  Return the largest 128-multiple divisor of
    dim_pad that is <= cap, preferring 256-multiples (v6e/v7x MXU is 2x256x256)."""
    cap = min(cap, dim_pad)
    best128, best256 = 128, None
    t = 128
    while t <= cap:
        if dim_pad % t == 0:
            best128 = t
            if t % 256 == 0:
                best256 = t
        t += 128
    if best256 is not None and 2 * best256 >= best128:
        return best256
    return best128


# ---------------------------------------------------------------------------
# Path A: weight fully resident in VMEM, 1-D grid over rows (common FC case).
# ---------------------------------------------------------------------------
def _fc_relu_resident_kernel(x_ref, w_ref, b_ref, o_ref):
    # x_ref: (tm, K) f32, w_ref: (K, N_pad) bf16 (VMEM-resident), b_ref: (1, N_pad) f32
    acc = jnp.dot(x_ref[...].astype(jnp.bfloat16), w_ref[...],
                  preferred_element_type=jnp.float32)
    o_ref[...] = jnp.maximum(acc + b_ref[...], 0.0)


def fc_relu_resident(x2d, w_kn, b2d):
    """Y = relu(X @ W + b) with W fully resident in VMEM.

    x2d:  (M, K)      f32 (cast to bf16 inside the kernel; no wrapper HBM pass)
    w_kn: (K, N_pad)  bf16, N_pad multiple of 128 (pre-transposed/padded at init)
    b2d:  (1, N_pad)  f32
    Returns (M, N_pad) f32.
    """
    M, K = x2d.shape
    Kw, N_pad = w_kn.shape
    assert Kw == K and N_pad % 128 == 0

    budget = _vmem_budget_bytes()
    work_budget = (budget * 3) // 4
    w_bytes = 2 * K * N_pad * 2                       # bf16 W, allow double-buffering
    per_row = 2 * K * x2d.dtype.itemsize + 2 * N_pad * 4  # x + out tiles, double-buffered
    tm_cap = max(16, int((work_budget - w_bytes) // per_row) // 16 * 16)
    tm = min(1024, _round_up(M, 16), tm_cap)
    # Guarantee >= 2 row tiles when possible so both v7x TensorCores get work.
    if pl.cdiv(M, tm) == 1 and M > 16:
        tm = _round_up(pl.cdiv(M, 2), 16)

    grid = (pl.cdiv(M, tm),)   # M is NOT padded; edge-block rows are masked on store.

    return pl.pallas_call(
        _fc_relu_resident_kernel,
        out_shape=jax.ShapeDtypeStruct((M, N_pad), jnp.float32),
        grid_spec=pltpu.PrefetchScalarGridSpec(
            num_scalar_prefetch=0,
            grid=grid,
            in_specs=[
                pl.BlockSpec((tm, K), lambda i: (i, 0)),
                pl.BlockSpec((K, N_pad), lambda i: (0, 0)),   # resident weight
                pl.BlockSpec((1, N_pad), lambda i: (0, 0)),
            ],
            out_specs=pl.BlockSpec((tm, N_pad), lambda i: (i, 0)),
        ),
        compiler_params=pltpu.CompilerParams(
            dimension_semantics=("parallel",),
            vmem_limit_bytes=budget,
        ),
    )(x2d, w_kn, b2d)


# ---------------------------------------------------------------------------
# Path B: K-tiled reduction (only used when W is too large to keep resident).
# ---------------------------------------------------------------------------
def _fc_relu_tiled_kernel(x_ref, w_ref, b_ref, o_ref):
    # x_ref: (tm, tk) bf16, w_ref: (tk, tn) bf16, b_ref: (1, tn) f32,
    # o_ref: (tm, tn) f32 output block, resident across the K ("arbitrary") axis
    # and used directly as the accumulator (no scratch).
    k = pl.program_id(2)

    @pl.when(k == 0)
    def _():
        o_ref[...] = jnp.zeros_like(o_ref)

    o_ref[...] += jnp.dot(x_ref[...], w_ref[...],
                          preferred_element_type=jnp.float32)

    @pl.when(k == pl.num_programs(2) - 1)
    def _():
        o_ref[...] = jnp.maximum(o_ref[...] + b_ref[...], 0.0)


def fc_relu_tiled(x2d, w_kn, b2d):
    """Y = relu(X @ W + b) for large K (W tiled along K, reduction axis last).

    x2d:  (M, K)          f32; K is zero-padded to K_pad and cast to bf16 here
                          (one fused wrapper op); M is not padded (cdiv grid).
    w_kn: (K_pad, N_pad)  bf16, K_pad/N_pad multiples of 128 (pre-padded at init)
    b2d:  (1, N_pad)      f32
    Returns (M, N_pad) f32.
    """
    M, K = x2d.shape
    K_pad, N_pad = w_kn.shape
    assert K_pad >= K and K_pad % 128 == 0 and N_pad % 128 == 0

    budget = _vmem_budget_bytes()
    tk = _pick_tile(K_pad, 2048)
    tn = _pick_tile(N_pad, 512)
    tm = min(512, _round_up(M, 16))
    if pl.cdiv(M, tm) == 1 and M > 16:
        tm = _round_up(pl.cdiv(M, 2), 16)

    # K genuinely needs zero padding (padded K columns must contribute zero);
    # pad + bf16-cast fuse into one wrapper pass over X.  M is never padded.
    if K_pad != K:
        x2d = jnp.pad(x2d, ((0, 0), (0, K_pad - K)))
    x2d = x2d.astype(jnp.bfloat16)

    grid = (pl.cdiv(M, tm), N_pad // tn, K_pad // tk)

    return pl.pallas_call(
        _fc_relu_tiled_kernel,
        out_shape=jax.ShapeDtypeStruct((M, N_pad), jnp.float32),
        grid_spec=pltpu.PrefetchScalarGridSpec(
            num_scalar_prefetch=0,
            grid=grid,
            in_specs=[
                pl.BlockSpec((tm, tk), lambda i, j, k: (i, k)),
                pl.BlockSpec((tk, tn), lambda i, j, k: (k, j)),
                pl.BlockSpec((1, tn), lambda i, j, k: (0, j)),
            ],
            out_specs=pl.BlockSpec((tm, tn), lambda i, j, k: (i, j)),
        ),
        compiler_params=pltpu.CompilerParams(
            dimension_semantics=("parallel", "parallel", "arbitrary"),
            vmem_limit_bytes=budget,
        ),
    )(x2d, w_kn, b2d)


class LIDFramePallas:
    """Pallas equivalent of LID_Frame.forward: outputs = ReLU(Linear(feature)).

    The nn.LSTM (self.blstm) is constructed in the PyTorch module but never used
    in forward(), so its parameters are intentionally not materialized here.
    """

    # bf16 weight up to this size is kept fully resident in VMEM (Path A).
    _RESIDENT_W_BYTES = 8 * 1024 * 1024

    def __init__(self, input_size, hidden_size_RNN, hidden_size_FC, key,
                 force_tiled=False):
        # TODO(synk): nn.LSTM parameters exist in the PyTorch module but are unused
        # in forward(); they are intentionally not implemented.
        self.input_size = input_size
        self.hidden_size_FC = hidden_size_FC

        k_w, k_b = jax.random.split(key)
        # Deterministic init mimicking nn.Linear's uniform(-1/sqrt(K), 1/sqrt(K)).
        bound = 1.0 / float(input_size) ** 0.5
        self.fc_weight = jax.random.uniform(
            k_w, (hidden_size_FC, input_size), jnp.float32, -bound, bound)
        self.fc_bias = jax.random.uniform(
            k_b, (hidden_size_FC,), jnp.float32, -bound, bound)

        N_pad = _round_up(hidden_size_FC, 128)
        self._b2d = jnp.zeros((1, N_pad), jnp.float32).at[
            0, :hidden_size_FC].set(self.fc_bias)

        w_bf16_bytes = input_size * N_pad * 2
        self._use_resident = (not force_tiled) and (
            w_bf16_bytes <= self._RESIDENT_W_BYTES)

        # Pre-transpose, N-pad and cast to bf16 ONCE at init (MXU-native inputs,
        # half the HBM/VMEM bytes).  K is only padded for the tiled fallback.
        w_t_bf16 = self.fc_weight.T.astype(jnp.bfloat16)
        if self._use_resident:
            self._w_kn = jnp.zeros((input_size, N_pad), jnp.bfloat16).at[
                :, :hidden_size_FC].set(w_t_bf16)
        else:
            K_pad = _round_up(input_size, 128)
            self._w_kn = jnp.zeros((K_pad, N_pad), jnp.bfloat16).at[
                :input_size, :hidden_size_FC].set(w_t_bf16)

    def __call__(self, feature):
        # feature: (..., input_size)  -> (..., hidden_size_FC)
        lead_shape = feature.shape[:-1]
        x2d = feature.reshape(-1, self.input_size)
        if self._use_resident:
            out_pad = fc_relu_resident(x2d, self._w_kn, self._b2d)
        else:
            out_pad = fc_relu_tiled(x2d, self._w_kn, self._b2d)
        # Single combined slice + reshape (one fused XLA op, not two copies).
        return out_pad[:, :self.hidden_size_FC].reshape(
            *lead_shape, self.hidden_size_FC)


if __name__ == "__main__":
    key = jax.random.PRNGKey(0)
    k_param, k_x = jax.random.split(key)

    seq, batch, input_size = 8, 2, 32
    hidden_size_RNN, hidden_size_FC = 16, 32

    feature = jax.random.normal(k_x, (seq, batch, input_size), jnp.float32)

    # Resident-weight fast path (the common case).
    model = LIDFramePallas(input_size, hidden_size_RNN, hidden_size_FC, k_param)
    out = jax.block_until_ready(model(feature))

    # Pure-JAX f32 reference of fc + relu.
    ref = jnp.maximum(
        jnp.einsum("sbi,oi->sbo", feature, model.fc_weight) + model.fc_bias, 0.0)
    assert out.shape == (seq, batch, hidden_size_FC)
    # bf16 MXU inputs + f32 accumulation -> loosened tolerance vs the f32 reference.
    assert jnp.allclose(out, ref, atol=2e-2, rtol=2e-2), float(
        jnp.max(jnp.abs(out - ref)))

    # K-tiled fallback path, exercised at the same small shapes for coverage.
    model_t = LIDFramePallas(input_size, hidden_size_RNN, hidden_size_FC, k_param,
                             force_tiled=True)
    out_t = jax.block_until_ready(model_t(feature))
    assert out_t.shape == (seq, batch, hidden_size_FC)
    assert jnp.allclose(out_t, ref, atol=2e-2, rtol=2e-2), float(
        jnp.max(jnp.abs(out_t - ref)))

    print("KERNEL_OK")
</pallas_src>

<mosaic_0001>
module attributes {stable_mosaic.version = 11 : i64} {
  func.func @_fc_relu_resident_kernel(%arg0: i32, %arg1: memref<16x32xf32, #tpu.memory_space<vmem>>, %arg2: memref<32x128xbf16, #tpu.memory_space<vmem>>, %arg3: memref<1x128xf32, #tpu.memory_space<vmem>>, %arg4: memref<16x128xf32, #tpu.memory_space<vmem>>) attributes {dimension_semantics = [#tpu.dimension_semantics<parallel>], iteration_bounds = array<i64: 1>, scalar_prefetch = 0 : i64, scratch_operands = 0 : i64, tpu.core_type = #tpu.core_type<tc>, window_params = [{transform_indices = @transform_0, window_bounds = array<i64: 16, 32>}, {pipeline_mode = #tpu.pipeline_mode<synchronous>, transform_indices = @transform_1, window_bounds = array<i64: 32, 128>}, {pipeline_mode = #tpu.pipeline_mode<synchronous>, transform_indices = @transform_2, window_bounds = array<i64: 1, 128>}, {transform_indices = @transform_3, window_bounds = array<i64: 16, 128>}]} {
    %c0 = arith.constant 0 : index
    %c0_0 = arith.constant 0 : index
    %0 = vector.load %arg1[%c0, %c0_0] : memref<16x32xf32, #tpu.memory_space<vmem>>, vector<16x32xf32>
    %1 = arith.truncf %0 : vector<16x32xf32> to vector<16x32xbf16>
    %c0_1 = arith.constant 0 : index
    %c0_2 = arith.constant 0 : index
    %2 = vector.load %arg2[%c0_1, %c0_2] : memref<32x128xbf16, #tpu.memory_space<vmem>>, vector<32x128xbf16>
    %cst = arith.constant dense<0.000000e+00> : vector<16x128xf32>
    %3 = tpu.matmul %1, %2, %cst {dimension_numbers = #tpu.dot_dimension_numbers<[1], [0], [0], [1], [0, 0, 1, 1], [], []>} : vector<16x32xbf16>, vector<32x128xbf16>, vector<16x128xf32> -> vector<16x128xf32>
    %c0_3 = arith.constant 0 : index
    %c0_4 = arith.constant 0 : index
    %4 = vector.load %arg3[%c0_3, %c0_4] : memref<1x128xf32, #tpu.memory_space<vmem>>, vector<1x128xf32>
    %5 = vector.broadcast %4 : vector<1x128xf32> to vector<16x128xf32>
    %6 = arith.addf %3, %5 : vector<16x128xf32>
    %cst_5 = arith.constant 0.000000e+00 : f32
    %7 = vector.broadcast %cst_5 : f32 to vector<16x128xf32>
    %8 = arith.maximumf %6, %7 : vector<16x128xf32>
    %c0_6 = arith.constant 0 : index
    %c0_7 = arith.constant 0 : index
    %9 = vector.load %arg4[%c0_6, %c0_7] : memref<16x128xf32, #tpu.memory_space<vmem>>, vector<16x128xf32>
    tpu.vector_store %arg4[%c0_6, %c0_7], %8 {strides = array<i32>} : memref<16x128xf32, #tpu.memory_space<vmem>>, vector<16x128xf32>,
    return
  }
  func.func @transform_0(%arg0: i32) -> (i32, i32) {
    %c0_i32 = arith.constant 0 : i32
    %c0_i32_0 = arith.constant 0 : i32
    return %arg0, %c0_i32 : i32, i32
  }
  func.func @transform_1(%arg0: i32) -> (i32, i32) {
    %c0_i32 = arith.constant 0 : i32
    %c0_i32_0 = arith.constant 0 : i32
    %c0_i32_1 = arith.constant 0 : i32
    return %c0_i32, %c0_i32_0 : i32, i32
  }
  func.func @transform_2(%arg0: i32) -> (i32, i32) {
    %c0_i32 = arith.constant 0 : i32
    %c0_i32_0 = arith.constant 0 : i32
    %c0_i32_1 = arith.constant 0 : i32
    return %c0_i32, %c0_i32_0 : i32, i32
  }
  func.func @transform_3(%arg0: i32) -> (i32, i32) {
    %c0_i32 = arith.constant 0 : i32
    %c0_i32_0 = arith.constant 0 : i32
    return %arg0, %c0_i32 : i32, i32
  }
}

</mosaic_0001>

<bundles_post_ra>
// kernel: tpu_custom_call.1
= control target key start
LH: loop header
LB: loop body
LE: loop exit
PB: predicated region body
PF: predicated region fallthrough
CT: control target
= control target key end

     0   :  { %8 = vsyncpa [#allocation3], 0  ;;  %s309_s0 = inlined_call_operand.hbm [shape: f32[16,32], index: 0, kind: input, shape index: {}]   ;;  %s310_s1 = inlined_call_operand.hbm [shape: bf16[32,128], index: 1, kind: input, shape index: {}]   ;;  %s311_s2 = inlined_call_operand.vmem [shape: f32[1,128], index: 2, kind: input, shape index: {}]   ;;  %s312_s3 = inlined_call_operand.hbm [shape: f32[16,128], index: 3, kind: output, shape index: {}]  }
   0x1   :  { %9 = vsyncpa [#allocation6], 0 }
   0x2   :  { %10 = vsyncpa [#allocation4], 0  ;;  %s235_s12 = smov [#allocation2]   ;;  %s163_s16 = scalar_lea.hbm %s309_s0, 256 }
   0x3   :  { %s16_s13 = sshll.u32 %s235_s12, 4  ;;  %p164_p0 = scmp.ne.s32.totalorder %s309_s0, %s163_s16  ;;  %s17_s13 = int_to_ptr.vmem [resolvable:$true] %s16_s13 }
   0x4   :  { %p167_p1 = scmp.lt.u32.totalorder %s163_s16, %s309_s0 }
   0x6   :  { %p169_p2 = pnand %p167_p1, %p164_p0 }
   0x8   :  { %172 = shalt.err (!%p169_p2)
}
   0x9   :  { %s173_s21 = scalar_lea.vmem %s17_s13, 256  ;;  %p178_p4 = scmp.lt.s32.totalorder %s17_s13, %s17_s13 }
   0xa   :  { %p174_p3 = scmp.ne.s32.totalorder %s17_s13, %s173_s21  ;;  %p179_p5 = scmp.lt.s32.totalorder %s173_s21, %s173_s21 }
   0xc   :  { %p180_p6 = por %p179_p5, %p178_p4 }
   0xe   :  { %p181_p7 = pnand %p180_p6, %p174_p3 }
  0x10   :  { %184 = shalt.err (!%p181_p7)
}
  0x11   :  { %s236_s22 = smov 128   ;;  %s237_s23 = smov 8  }
  0x12   :  { %22 = dma.hbm_to_vmem [thread:$0]  %s309_s0, 256, %s17_s13, [#allocation3], %s236_s22, %s236_s22, %s237_s23  }
  0x13   :  { %s238_s26 = smov [#allocation5]   ;;  %s185_s30 = scalar_lea.hbm %s310_s1, 256 }
  0x14   :  { %s28_s27 = sshll.u32 %s238_s26, 4  ;;  %p186_p8 = scmp.ne.s32.totalorder %s310_s1, %s185_s30  ;;  %s29_s27 = int_to_ptr.vmem [resolvable:$true] %s28_s27 }
  0x15   :  { %p189_p9 = scmp.lt.u32.totalorder %s185_s30, %s310_s1 }
  0x17   :  { %p191_p10 = pnand %p189_p9, %p186_p8 }
  0x19   :  { %194 = shalt.err (!%p191_p10)
}
  0x1a   :  { %s195_s8 = scalar_lea.vmem %s29_s27, 256  ;;  %p200_p12 = scmp.lt.s32.totalorder %s29_s27, %s29_s27 }
  0x1b   :  { %p196_p11 = scmp.ne.s32.totalorder %s29_s27, %s195_s8  ;;  %p201_p13 = scmp.lt.s32.totalorder %s195_s8, %s195_s8 }
  0x1d   :  { %p202_p0 = por %p201_p13, %p200_p12 }
  0x1f   :  { %p203_p1 = pnand %p202_p0, %p196_p11 }
  0x21   :  { %206 = shalt.err (!%p203_p1)
}
  0x22   :  { %s239_s0 = smov 64   ;;  %s240_s9 = smov 4  }
  0x23   :  { %34 = dma.hbm_to_vmem [thread:$0]  %s310_s1, 256, %s29_s27, [#allocation6], %s239_s0, %s239_s0, %s240_s9  }
  0x24   :  { %229 = dma.done.wait [#allocation3], 256  }
  0x25   :  { %230 = vsyncadd [#allocation3], 4294967040 }
  0x26   :  { %231 = dma.done.wait [#allocation6], 256  }
  0x27   :  { %232 = vsyncadd [#allocation6], 4294967040  ;;  %v241_v0 = vmov 0.0   ;;  %vm242_vm0 = vmmov 0   ;;  %v161_v1 = vld [vmem:[#allocation5] sm:$0xff]   ;;  %v162_v2 = vld [vmem:[#allocation5 + $0x8] sm:$0xff]  }
  0x28   :  { %144 = vmatprep.subr.bf16.mxu0 %v241_v0  ;;  %148 = vmatprep.mubr.msk.bf16.mxu0 %vm242_vm0, %v241_v0  ;;  %v44_v3 = vld [vmem:[#allocation2] sm:$0xff]  ;;  %v45_v4 = vld [vmem:[#allocation2 + $0x8] sm:$0xff]  ;;  %vm70_vm1 = vcmask 261120   ;;  %s243_s13 = smov [#allocation7]  }
  0x29   :  { %145 = vmatpush3.bf16.msra.mxu0 %v161_v1  ;;  %v46_v5 = vpack.c.bf16 %v45_v4, %v44_v3  ;;  %v137_v6 = vld [vmem:[%s311_s2] ss:$0 sm:$0xff]  ;;  %s124_s14 = sshll.u32 %s243_s13, 4  ;;  %s125_s14 = int_to_ptr.vmem [resolvable:$true] %s124_s14 }
  0x2a   :  { %146 = vmatprep.subr.bf16.mxu0 %v241_v0  ;;  %s207_s15 = scalar_lea.vmem %s125_s14, 256  ;;  %p212_p3 = scmp.lt.s32.totalorder %s125_s14, %s125_s14 }
  0x2b   :  { %p208_p2 = scmp.ne.s32.totalorder %s125_s14, %s207_s15  ;;  %p213_p4 = scmp.lt.s32.totalorder %s207_s15, %s207_s15 }
  0x2d   :  { %147 = vmatpush3.bf16.msra.mxu0 %v162_v2  ;;  %p214_p5 = por %p213_p4, %p212_p3 }
  0x2f   :  { %p215_p6 = pnand %p214_p5, %p208_p2 }
  0x30   :  { %149 = vmatmul.mubr.msk.bf16.vlgmr.msra.gmra.mrb[0].mxu0 %vm70_vm1, %v46_v5 }
 0x103   :  { %v108_v7 = vpop.f32.mrb[0].mxu0 }
 0x104   :  { %v109_v8 = vadd.f32 %v137_v6, %v108_v7  ;;  %v150_v9 = vpop.f32.mrb[1].mxu0 }
 0x105   :  { %v111_v10 = vpop.f32.mrb[2].mxu0 }
 0x106   :  { %v115_v11 = vmax.f32 %v109_v8, 0.0  ;;  %v112_v12 = vadd.f32 %v137_v6, %v111_v10  ;;  %v151_v13 = vpop.f32.mrb[3].mxu0 }
 0x108   :  { %117 = vst [vmem:[#allocation7] sm:$0xff] %v115_v11  ;;  %v116_v14 = vmax.f32 %v112_v12, 0.0 }
 0x10a   :  { %118 = vst [vmem:[#allocation7 + $0x8] sm:$0xff] %v116_v14 }
 0x10b   :  { %218 = shalt.err (!%p215_p6)
}
 0x10c   :  { %s219_s17 = scalar_lea.hbm %s312_s3, 256 }
 0x10d   :  { %p220_p7 = scmp.ne.s32.totalorder %s312_s3, %s219_s17  ;;  %p223_p8 = scmp.lt.u32.totalorder %s219_s17, %s312_s3 }
 0x10f   :  { %p225_p9 = pnand %p223_p8, %p220_p7 }
 0x111   :  { %228 = shalt.err (!%p225_p9)
}
 0x112   :  { %130 = dma.vmem_to_hbm [thread:$0]  %s125_s14, 256, %s312_s3, [#allocation4], %s236_s22, %s236_s22, %s237_s23  }
 0x113   :  { %233 = dma.done.wait [#allocation4], 256  }
 0x114   :  { %234 = vsyncadd [#allocation4], 4294967040 }
 0x115   :  { %134 = vsyncpa [#allocation3], 1 }
 0x116   :  { %135 = vsyncpa [#allocation6], 1 }
 0x117   :  { %136 = vsyncpa [#allocation4], 1 }

</bundles_post_ra>
